<compile_context>
chip_gen: v7x
topology: tpu7x:2x2x1
jax: 0.10.0
libtpu: 0.0.40
codegen_flags: <defaults>
</compile_context>

<pallas_src>
import functools

import jax
import jax.numpy as jnp
from jax.experimental import pallas as pl
from jax.experimental.pallas import tpu as pltpu


def _round_up(x, m):
    return (x + m - 1) // m * m


def _tpu_defaults():
    """(tile_s_target, tile_i_target, vmem_cap_bytes, small_vmem, is_v5)."""
    vmem_cap = None
    try:
        info = pltpu.get_tpu_info()
        vmem_cap = int(getattr(info, "vmem_capacity_bytes"))
    except Exception:
        vmem_cap = None
    kind = ""
    try:
        kind = jax.devices()[0].device_kind.lower()
    except Exception:
        kind = ""
    is_v5 = "v5" in kind
    if vmem_cap is None:
        # Conservative fallback: assume the small-VMEM (v7x-style, 64 MiB)
        # part unless the device kind clearly identifies a 128 MiB generation.
        if is_v5 or "v6" in kind:
            vmem_cap = 128 * 1024 * 1024
        else:
            vmem_cap = 64 * 1024 * 1024
    small_vmem = vmem_cap <= 64 * 1024 * 1024

    if small_vmem:
        # v7x-class: 64 MiB VMEM, 2 TCs, ~3.2 TB/s HBM. Spend VMEM on tile_s
        # first (AI lever), tile_i second.
        tile_s_target, tile_i_target = 512, 256
    elif is_v5:
        # v5e-class: crossover ~240 FLOP/byte; keep tile_s a multiple of 128.
        # TODO(synk): with the spare 128 MiB VMEM, pipeline_mode=pl.Buffered(3)
        # on the two weight BlockSpecs would hide HBM latency jitter.
        tile_s_target, tile_i_target = 384, 512
    else:
        # v6e-class: crossover ~655 FLOP/byte -> big token tiles.
        tile_s_target, tile_i_target = 1024, 512
    return tile_s_target, tile_i_target, vmem_cap, small_vmem, is_v5


def _pick_tile_i(intermediate_size, target):
    """Largest multiple of 128 that divides I and is <= target (else I itself)."""
    target = min(target, intermediate_size)
    if intermediate_size % 128 == 0:
        d = (target // 128) * 128
        while d >= 128:
            if intermediate_size % d == 0:
                return d
            d -= 128
    return intermediate_size  # full-extent tile is always layout-legal


def prepare_mistral_mlp_weights(w_gate_up, w_down, *, tile_i=None, dtype=None):
    """One-time weight preparation (call at weight-load time, not per forward).

    w_gate_up: [2*I, H]  PyTorch nn.Linear layout (rows [0,I) gate, [I,2I) up).
    w_down:    [H, I]    PyTorch nn.Linear layout.

    Returns (w_gu_packed [H, 2*I], w_down_t [I, H], tile_i), where column block
    j (width 2*tile_i) of w_gu_packed is [gate chunk j | up chunk j], so the
    kernel does a single fused gate+up MXU matmul per tile.
    """
    two_i, hidden = w_gate_up.shape
    inter = two_i // 2
    assert w_down.shape == (hidden, inter)

    if dtype is None:
        dtype = w_gate_up.dtype
    if tile_i is None:
        _, tile_i_target, _, _, _ = _tpu_defaults()
        tile_i = _pick_tile_i(inter, tile_i_target)
    assert inter % tile_i == 0, "tile_i must divide intermediate_size"
    assert tile_i % 128 == 0 or tile_i == inter, "tile_i must be lane-aligned"

    wg = w_gate_up[:inter, :].T.astype(dtype)   # [H, I]
    wu = w_gate_up[inter:, :].T.astype(dtype)   # [H, I]
    n = inter // tile_i
    w_gu_packed = jnp.concatenate(
        [wg.reshape(hidden, n, tile_i), wu.reshape(hidden, n, tile_i)], axis=-1
    ).reshape(hidden, 2 * inter)
    w_down_t = w_down.T.astype(dtype)           # [I, H]
    # TODO(synk): fp8 (v7x) / int8 (v5e, v6e) weight quantization with
    # per-output-tile scales would halve decode-time HBM weight traffic.
    return w_gu_packed, w_down_t, tile_i


def _estimate_vmem_bytes(tile_s, tile_i, H, in_bytes, w_bytes, out_bytes, f32_out):
    """Per-step VMEM footprint incl. double buffers and f32 temporaries."""
    acc_bytes = 0 if f32_out else tile_s * H * 4
    return (2 * tile_s * H * in_bytes            # x double-buffer
            + 2 * H * (2 * tile_i) * w_bytes     # packed gate|up double-buffer
            + 2 * tile_i * H * w_bytes           # down-proj double-buffer
            + 2 * tile_s * H * out_bytes         # output double-buffer
            + acc_bytes                          # f32 accumulator (non-f32 out)
            + tile_s * (2 * tile_i) * 4          # f32 gate|up matmul result
            + tile_s * tile_i * 4)               # f32 act temporary


def _mlp_kernel_acc(x_ref, wgu_ref, wd_ref, o_ref, acc_ref, *, tile_i):
    """Variant with a separate f32 accumulator (non-float32 output dtype)."""
    j = pl.program_id(1)  # intermediate (reduction) axis — last grid axis

    @pl.when(j == 0)
    def _():
        acc_ref[...] = jnp.zeros_like(acc_ref)

    x = x_ref[...]                                                     # [tS, H]
    gu = jnp.dot(x, wgu_ref[...], preferred_element_type=jnp.float32)  # [tS, 2*tI]
    gate = gu[:, :tile_i]
    up = gu[:, tile_i:]
    act = (gate * jax.nn.sigmoid(gate)) * up                           # SiLU(g)*u
    acc_ref[...] += jnp.dot(act.astype(wd_ref.dtype), wd_ref[...],
                            preferred_element_type=jnp.float32)        # [tS, H]

    @pl.when(j == pl.num_programs(1) - 1)
    def _():
        o_ref[...] = acc_ref[...].astype(o_ref.dtype)


def _mlp_kernel_f32out(x_ref, wgu_ref, wd_ref, o_ref, *, tile_i):
    """float32 output: accumulate directly into the resident output block
    (its index_map ignores j), saving the tile_s*H*4-byte scratch."""
    j = pl.program_id(1)

    @pl.when(j == 0)
    def _():
        o_ref[...] = jnp.zeros_like(o_ref)

    x = x_ref[...]
    gu = jnp.dot(x, wgu_ref[...], preferred_element_type=jnp.float32)
    gate = gu[:, :tile_i]
    up = gu[:, tile_i:]
    act = (gate * jax.nn.sigmoid(gate)) * up
    o_ref[...] += jnp.dot(act.astype(wd_ref.dtype), wd_ref[...],
                          preferred_element_type=jnp.float32)


def mistral_mlp(x, w_gu_packed, w_down_t, *, tile_i, tile_s=None, out_dtype=None):
    """Fused Mistral MLP forward.

    x:            [S, H] activations (f32 or bf16).
    w_gu_packed:  [H, 2*I] packed gate/up weights from prepare_mistral_mlp_weights.
    w_down_t:     [I, H]   transposed down-proj weights.
    """
    S, H = x.shape
    I, H2 = w_down_t.shape
    assert H2 == H and w_gu_packed.shape == (H, 2 * I)
    assert I % tile_i == 0
    if out_dtype is None:
        out_dtype = x.dtype
    f32_out = jnp.dtype(out_dtype) == jnp.dtype(jnp.float32)

    tile_s_target, _, vmem_cap, small_vmem, _ = _tpu_defaults()
    headroom = 0.85 if small_vmem else 0.9

    # ---- token tile selection -------------------------------------------------
    S8 = _round_up(S, 8)
    if tile_s is None:
        tile_s = tile_s_target
    tile_s = max(8, min(tile_s, S8))
    # Guarantee >= 2 token tiles on 2-TC chips when S permits (megacore).
    mxu_align = 128
    if small_vmem and S8 >= 2 * mxu_align and tile_s * 2 > S8:
        tile_s = min(tile_s, max(mxu_align, (S8 // 2) // mxu_align * mxu_align))
    tile_s = _round_up(tile_s, 8)

    in_bytes = jnp.dtype(x.dtype).itemsize
    w_bytes = jnp.dtype(w_gu_packed.dtype).itemsize
    out_bytes = jnp.dtype(out_dtype).itemsize

    # Shrink tile_s if the footprint would overflow the per-generation headroom.
    while (tile_s > 128 and
           _estimate_vmem_bytes(tile_s, tile_i, H, in_bytes, w_bytes, out_bytes,
                                f32_out) > headroom * vmem_cap):
        tile_s = _round_up(tile_s // 2, 8)

    S_pad = _round_up(S, tile_s)
    if S_pad != S:
        # TODO(synk): pad only the tail tile (masked writes) to avoid the full
        # S*H HBM round trip for large ragged prefill.
        x = jnp.pad(x, ((0, S_pad - S), (0, 0)))

    est = _estimate_vmem_bytes(tile_s, tile_i, H, in_bytes, w_bytes, out_bytes,
                               f32_out)
    vmem_limit = int(min(max(1.25 * est + (8 << 20), 32 << 20),
                         headroom * vmem_cap))

    grid = (S_pad // tile_s, I // tile_i)

    cost = pl.CostEstimate(
        flops=int(6 * S_pad * H * I),
        transcendentals=int(S_pad * I),
        bytes_accessed=int(S_pad * H * (in_bytes + out_bytes)
                           + grid[0] * 3 * H * I * w_bytes),
    )

    if f32_out:
        kernel = functools.partial(_mlp_kernel_f32out, tile_i=tile_i)
        scratch = []
    else:
        kernel = functools.partial(_mlp_kernel_acc, tile_i=tile_i)
        scratch = [pltpu.VMEM((tile_s, H), jnp.float32)]

    out = pl.pallas_call(
        kernel,
        out_shape=jax.ShapeDtypeStruct((S_pad, H), out_dtype),
        grid_spec=pltpu.PrefetchScalarGridSpec(
            num_scalar_prefetch=0,
            grid=grid,
            in_specs=[
                pl.BlockSpec((tile_s, H), lambda s, j: (s, 0)),        # x tile
                pl.BlockSpec((H, 2 * tile_i), lambda s, j: (0, j)),    # gate|up tile
                pl.BlockSpec((tile_i, H), lambda s, j: (j, 0)),        # down tile
            ],
            out_specs=pl.BlockSpec((tile_s, H), lambda s, j: (s, 0)),  # out tile
            scratch_shapes=scratch,
        ),
        compiler_params=pltpu.CompilerParams(
            # Token tiles independent -> parallel (megacore sharding on v7x);
            # intermediate axis is the down-proj reduction -> arbitrary (last).
            dimension_semantics=("parallel", "arbitrary"),
            vmem_limit_bytes=vmem_limit,
        ),
        cost_estimate=cost,
    )(x, w_gu_packed, w_down_t)

    if S_pad != S:
        out = out[:S]
    return out


def mistral_mlp_ref(x, w_gate_up, w_down):
    gate_up = x @ w_gate_up.T
    I = w_gate_up.shape[0] // 2
    gate, up = gate_up[..., :I], gate_up[..., I:]
    act = jax.nn.silu(gate) * up
    return act @ w_down.T


if __name__ == "__main__":
    # Small Mistral-like config (flattened batch*seq tokens).
    hidden_size = 256
    intermediate_size = 512
    seq = 24  # deliberately not a multiple of tile_s to exercise padding

    key = jax.random.PRNGKey(0)
    kx, kgu, kd = jax.random.split(key, 3)

    x = jax.random.normal(kx, (seq, hidden_size), dtype=jnp.float32)
    # Synthetic weights in PyTorch nn.Linear layout [out_features, in_features].
    w_gate_up = jax.random.normal(
        kgu, (2 * intermediate_size, hidden_size), dtype=jnp.float32) * 0.02
    w_down = jax.random.normal(
        kd, (hidden_size, intermediate_size), dtype=jnp.float32) * 0.02

    ref = mistral_mlp_ref(x, w_gate_up, w_down)

    # --- f32 path, explicit small tiles to exercise both grid axes.
    w_gu_p, w_d_t, tile_i = prepare_mistral_mlp_weights(
        w_gate_up, w_down, tile_i=128)
    out = mistral_mlp(x, w_gu_p, w_d_t, tile_i=tile_i, tile_s=16)
    out = jax.block_until_ready(out)
    assert out.shape == ref.shape == (seq, hidden_size)
    assert jnp.allclose(out, ref, atol=1e-4, rtol=1e-4), "f32 mismatch vs reference"

    # --- f32 path, auto (per-generation) tile selection.
    w_gu_a, w_d_a, tile_i_a = prepare_mistral_mlp_weights(w_gate_up, w_down)
    out_a = mistral_mlp(x, w_gu_a, w_d_a, tile_i=tile_i_a)
    out_a = jax.block_until_ready(out_a)
    assert jnp.allclose(out_a, ref, atol=1e-4, rtol=1e-4), "auto-tile mismatch"

    # --- bf16 path (halved HBM weight traffic, f32 accumulation); loose check.
    w_gu_b, w_d_b, tile_i_b = prepare_mistral_mlp_weights(
        w_gate_up, w_down, tile_i=128, dtype=jnp.bfloat16)
    out_b = mistral_mlp(x.astype(jnp.bfloat16), w_gu_b, w_d_b,
                        tile_i=tile_i_b, tile_s=16, out_dtype=jnp.bfloat16)
    out_b = jax.block_until_ready(out_b).astype(jnp.float32)
    rel_err = jnp.linalg.norm(out_b - ref) / (jnp.linalg.norm(ref) + 1e-12)
    assert rel_err < 5e-2, f"bf16 relative error too large: {rel_err}"

    # TODO(synk): quantization_config / tensor-parallel sharding of the original
    # build_*_linear builders are not modeled (dense single-device weights only).
    print("KERNEL_OK")
</pallas_src>

<mosaic_0001>
module attributes {stable_mosaic.version = 11 : i64} {
  func.func @_mlp_kernel_f32out(%arg0: i32, %arg1: i32, %arg2: memref<16x256xf32, #tpu.memory_space<vmem>>, %arg3: memref<256x256xf32, #tpu.memory_space<vmem>>, %arg4: memref<128x256xf32, #tpu.memory_space<vmem>>, %arg5: memref<16x256xf32, #tpu.memory_space<vmem>>) attributes {dimension_semantics = [#tpu.dimension_semantics<parallel>, #tpu.dimension_semantics<arbitrary>], iteration_bounds = array<i64: 2, 4>, scalar_prefetch = 0 : i64, scratch_operands = 0 : i64, tpu.core_type = #tpu.core_type<tc>, window_params = [{transform_indices = @transform_0, window_bounds = array<i64: 16, 256>}, {transform_indices = @transform_1, window_bounds = array<i64: 256, 256>}, {transform_indices = @transform_2, window_bounds = array<i64: 128, 256>}, {transform_indices = @transform_3, window_bounds = array<i64: 16, 256>}]} {
    %c0_i32 = arith.constant 0 : i32
    %0 = arith.cmpi eq, %arg1, %c0_i32 : i32
    %1 = arith.extui %0 : i1 to i32
    %c0_i32_0 = arith.constant 0 : i32
    %2 = arith.cmpi ne, %1, %c0_i32_0 : i32
    scf.if %2 {
      %cst_12 = arith.constant 0.000000e+00 : f32
      %20 = vector.broadcast %cst_12 : f32 to vector<16x256xf32>
      %c0_13 = arith.constant 0 : index
      %c0_14 = arith.constant 0 : index
      %21 = vector.load %arg5[%c0_13, %c0_14] : memref<16x256xf32, #tpu.memory_space<vmem>>, vector<16x256xf32>
      tpu.vector_store %arg5[%c0_13, %c0_14], %20 {strides = array<i32>} : memref<16x256xf32, #tpu.memory_space<vmem>>, vector<16x256xf32>,
    } else {
    }
    %c0 = arith.constant 0 : index
    %c0_1 = arith.constant 0 : index
    %3 = vector.load %arg2[%c0, %c0_1] : memref<16x256xf32, #tpu.memory_space<vmem>>, vector<16x256xf32>
    %c0_2 = arith.constant 0 : index
    %c0_3 = arith.constant 0 : index
    %4 = vector.load %arg3[%c0_2, %c0_3] : memref<256x256xf32, #tpu.memory_space<vmem>>, vector<256x256xf32>
    %cst = arith.constant dense<0.000000e+00> : vector<16x256xf32>
    %5 = tpu.matmul %3, %4, %cst {dimension_numbers = #tpu.dot_dimension_numbers<[1], [0], [0], [1], [0, 0, 1, 1], [], []>} : vector<16x256xf32>, vector<256x256xf32>, vector<16x256xf32> -> vector<16x256xf32>
    %6 = vector.extract_strided_slice %5 {offsets = [0, 0], sizes = [16, 128], strides = [1, 1]} : vector<16x256xf32> to vector<16x128xf32>
    %7 = vector.extract_strided_slice %5 {offsets = [0, 128], sizes = [16, 128], strides = [1, 1]} : vector<16x256xf32> to vector<16x128xf32>
    %8 = arith.negf %6 : vector<16x128xf32>
    %9 = math.exp %8 : vector<16x128xf32>
    %cst_4 = arith.constant 1.000000e+00 : f32
    %10 = vector.broadcast %cst_4 : f32 to vector<16x128xf32>
    %11 = arith.addf %10, %9 : vector<16x128xf32>
    %12 = arith.divf %10, %11 : vector<16x128xf32>
    %13 = arith.mulf %6, %12 : vector<16x128xf32>
    %14 = arith.mulf %13, %7 : vector<16x128xf32>
    %c0_5 = arith.constant 0 : index
    %c0_6 = arith.constant 0 : index
    %15 = vector.load %arg5[%c0_5, %c0_6] : memref<16x256xf32, #tpu.memory_space<vmem>>, vector<16x256xf32>
    %c0_7 = arith.constant 0 : index
    %c0_8 = arith.constant 0 : index
    %16 = vector.load %arg4[%c0_7, %c0_8] : memref<128x256xf32, #tpu.memory_space<vmem>>, vector<128x256xf32>
    %cst_9 = arith.constant dense<0.000000e+00> : vector<16x256xf32>
    %17 = tpu.matmul %14, %16, %cst_9 {dimension_numbers = #tpu.dot_dimension_numbers<[1], [0], [0], [1], [0, 0, 1, 1], [], []>} : vector<16x128xf32>, vector<128x256xf32>, vector<16x256xf32> -> vector<16x256xf32>
    %18 = arith.addf %15, %17 : vector<16x256xf32>
    %c0_10 = arith.constant 0 : index
    %c0_11 = arith.constant 0 : index
    %19 = vector.load %arg5[%c0_10, %c0_11] : memref<16x256xf32, #tpu.memory_space<vmem>>, vector<16x256xf32>
    tpu.vector_store %arg5[%c0_10, %c0_11], %18 {strides = array<i32>} : memref<16x256xf32, #tpu.memory_space<vmem>>, vector<16x256xf32>,
    return
  }
  func.func @transform_0(%arg0: i32, %arg1: i32) -> (i32, i32) {
    %c0_i32 = arith.constant 0 : i32
    %c0_i32_0 = arith.constant 0 : i32
    return %arg0, %c0_i32 : i32, i32
  }
  func.func @transform_1(%arg0: i32, %arg1: i32) -> (i32, i32) {
    %c0_i32 = arith.constant 0 : i32
    %c0_i32_0 = arith.constant 0 : i32
    return %c0_i32, %arg1 : i32, i32
  }
  func.func @transform_2(%arg0: i32, %arg1: i32) -> (i32, i32) {
    %c0_i32 = arith.constant 0 : i32
    %c0_i32_0 = arith.constant 0 : i32
    return %arg1, %c0_i32 : i32, i32
  }
  func.func @transform_3(%arg0: i32, %arg1: i32) -> (i32, i32) {
    %c0_i32 = arith.constant 0 : i32
    %c0_i32_0 = arith.constant 0 : i32
    return %arg0, %c0_i32 : i32, i32
  }
}

</mosaic_0001>

<bundles_post_ra>
// kernel: tpu_custom_call.1
= control target key start
LH: loop header
LB: loop body
LE: loop exit
PB: predicated region body
PF: predicated region fallthrough
CT: control target
= control target key end

     0   :  { %s1707_s0 = inlined_call_operand.hbm [shape: f32[32,256], index: 0, kind: input, shape index: {}]   ;;  %s1708_s1 = inlined_call_operand.hbm [shape: f32[256,1024], index: 1, kind: input, shape index: {}]   ;;  %s1709_s2 = inlined_call_operand.hbm [shape: f32[512,256], index: 2, kind: input, shape index: {}]   ;;  %s1710_s3 = inlined_call_operand.hbm [shape: f32[32,256], index: 3, kind: output, shape index: {}]  }
   0x1   :  { %1727 = sst [smem:[#allocation18_spill]] %s1708_s1 }
   0x2   :  { %1728 = sst [smem:[#allocation19_spill]] %s1710_s3 }
   0x3   :  { %8 = vsyncpa [#allocation3], 0 }
   0x4   :  { %10 = vsyncpa [#allocation3 + $0x1], 0 }
   0x5   :  { %11 = vsyncpa [#allocation6], 0 }
   0x6   :  { %13 = vsyncpa [#allocation6 + $0x1], 0 }
   0x7   :  { %14 = vsyncpa [#allocation4], 0 }
   0x8   :  { %16 = vsyncpa [#allocation4 + $0x1], 0  ;;  %s1224_s12 = smov 0   ;;  %s1226_s13 = smov 0  }
   0x9   :  { %s1228_s14 = smov 0   ;;  %s1230_s15 = smov 0  }
   0xa   :  { %s1232_s16 = smov 0   ;;  %s1234_s17 = smov 0  }
   0xb   :  { %s1236_s18 = smov 0   ;;  %s1238_s19 = smov 0  }
   0xc   :  { %s1240_s20 = smov 0   ;;  %s1242_s21 = smov 0  }
   0xd   :  { %s1244_s22 = smov 0  }
   0xe LB: > { %1729 = sst [smem:[#allocation12_spill]] %s1171_s17  ;;  %s31_s23 = sadd.s32 1, %s1183_s20  ;;  %s1191_s22 = sphi %s1244_s22, %s22_s22   ;;  %s1187_s21 = sphi %s1242_s21, %s1765_s21   ;;  %s1183_s20 = sphi %s1240_s20, %s1772_s20   ;;  %s1179_s19 = sphi %s1238_s19, %s1763_s19   ;;  %s1175_s18 = sphi %s1236_s18, %s1771_s18   ;;  %s1171_s17 = sphi %s1234_s17, %s1762_s17   ;;  %s1167_s16 = sphi %s1232_s16, %s1770_s16   ;;  %s1163_s15 = sphi %s1230_s15, %s1769_s15   ;;  %s1159_s14 = sphi %s1228_s14, %s1768_s14   ;;  %s1155_s13 = sphi %s1226_s13, %s1767_s13   ;;  %s1151_s12 = sphi %s1224_s12, %s1766_s12  }
   0xf   : > { %1730 = sst [smem:[#allocation13_spill]] %s1187_s21  ;;  %p1712_p0 = scmp.eq.s32.totalorder %s1191_s22, 0 }
  0x10   : > { %p1281_p1 = scmp.ge.s32.totalorder %s31_s23, 4  ;;  %s67_s25 = sadd.s32 1, %s1159_s14 }
  0x11   : > { %p74_p2 = scmp.ne.s32.totalorder %s1159_s14, %s1155_s13  ;;  %p1711_p5 = scmp.lt.s32.totalorder %s1191_s22, 8 }
  0x12   : > { %s1774_s23 = smov (%p1281_p1, %s31_s23), 0  ;;  %s178_s27 = sand.u32 1, %s1191_s22  }
  0x13   : > { %1732 = sst [smem:[#allocation14_spill]] %s1774_s23  ;;  %p76_p4 = por %p74_p2, %p1712_p0 }
  0x14   : > { %s64_s26 = ssub.s32 %s1183_s20, %s1774_s23  ;;  %s1717_s29 = sand.u32 1, %s1159_s14  }
  0x15   : > { %p65_p6 = scmp.eq.s32.totalorder %s64_s26, 0  ;;  %s724_s30 = sshll.u32 %s1717_s29, 9 }
  0x16   : > { %s747_s4 = sshll.u32 %s1183_s20, 8  ;;  %s1734_s1 = sld [smem:[#allocation18_spill]] }
  0x17   : > { %s1301_s28 = scalar_select %p65_p6, %s1159_s14, %s67_s25  }
  0x18   : > { %s182_s8 = scalar_lea.vmem [#allocation5], %s724_s30  ;;  %p1314_p7 = pnand %p1711_p5, %p76_p4 }
  0x19   : > { %1733 = sst [smem:[#allocation15_spill]] %s1301_s28  ;;  %s189_s9 = sshll.u32 %s182_s8, 4  ;;  %s1318_s9 = int_to_ptr.vmem [resolvable:$true] %s189_s9 }
  0x1a   : > { %s1321_s11 = scalar_lea.sflag [#allocation6], %s178_s27  ;;  %p1718_p10 = pneg %p1314_p7 }
  0x1c   : > { %s1310_s7 = scalar_lea.hbm %s1734_s1, %s747_s4  ;;  %s980_s4 = scalar_lea.hbm %s1734_s1, 32768 }
  0x1d   : > { %s975_s25 = scalar_lea.hbm %s1310_s7, 8192  ;;  %p981_p13 = scmp.lt.u32.totalorder %s1310_s7, %s1734_s1 }
  0x1e   : > { %p976_p9 = scmp.ne.s32.totalorder %s1310_s7, %s975_s25  ;;  %p982_p2 = scmp.lt.u32.totalorder %s980_s4, %s975_s25 }
  0x1f   : > { %p984_p6 = scmp.lt.u32.totalorder %s975_s25, %s1310_s7 }
  0x20   : > { %p978_p11 = pnand %p1718_p10, %p976_p9  ;;  %p983_p4 = por %p982_p2, %p981_p13 }
  0x22   : > { %p979_p12 = pneg %p978_p11  ;;  %p985_p5 = por %p984_p6, %p983_p4 }
  0x24   : > { %p986_p3 = pnand %p985_p5, %p979_p12 }
  0x26   : > { %989 = shalt.err (!%p986_p3)
}
  0x27   : > { %s990_s27 = scalar_lea.vmem %s1318_s9, 8192  ;;  %s1193_s8 = smov [#allocation5]  }
  0x28   : > { %p991_p9 = scmp.ne.s32.totalorder %s1318_s9, %s990_s27  ;;  %s995_s26 = sshll.u32 %s1193_s8, 4  ;;  %s996_s26 = int_to_ptr.vmem [resolvable:$false] %s995_s26 }
  0x29   : > { %s997_s30 = scalar_lea.vmem %s996_s26, 16384  ;;  %p998_p8 = scmp.lt.s32.totalorder %s1318_s9, %s996_s26 }
  0x2a   : > { %p993_p11 = pnand %p991_p9, %p1718_p10  ;;  %p999_p13 = scmp.lt.s32.totalorder %s997_s30, %s990_s27 }
  0x2c   : > { %p994_p0 = pneg %p993_p11  ;;  %p1000_p2 = por %p999_p13, %p998_p8 }
  0x2e   : > { %p1001_p4 = pnand %p1000_p2, %p994_p0 }
  0x30   : > { %1004 = shalt.err (!%p1001_p4)
}
  0x31   : > { %s1194_s25 = smov 1024   ;;  %s1713_s4 = smov 256  }
  0x32   : > { %s1715_s5 = smov 16   ;;  %p219_p0 = scmp.lt.s32.totalorder %s1191_s22, 9 }
  0x33   : > { %862 = dma.hbm_to_vmem [thread:$0]  (!%p1314_p7), %s1310_s7, 8192, %s1318_s9, %s1321_s11, %s1194_s25, %s1713_s4, %s1715_s5  }
  0x34   : > { %p1736_p3 = scmp.ge.s32.totalorder %s1191_s22, 1  ;;  %s1359_s27 = sadd.s32 4294967295, %s1191_s22  }
  0x35   : > { %s717_s8 = sadd.s32 4294967294, %s1191_s22   ;;  %s34_s26 = sadd.s32 1, %s1187_s21 }
  0x36   : > { %p1354_p5 = pnand %p1736_p3, %p219_p0  ;;  %s41_s30 = sadd.s32 1, %s1171_s17 }
  0x37   : > { %s1776_s26 = smov (!%p1281_p1, %s34_s26), %s1187_s21  ;;  %p48_p8 = scmp.ne.s32.totalorder %s1171_s17, %s1167_s16 }
  0x38   : > { %s1737_s6 = scalar_select %p1354_p5, 1, 0 }
  0x39   : > { %p54_p12 = scmp.ne.s32.totalorder %s1167_s16, %s1163_s15  ;;  %p36_p6 = scmp.ge.s32.totalorder %s1776_s26, 2 }
  0x3a   : > { %p55_p9 = scmp.eq.s32.totalorder %s1359_s27, 0  ;;  %p1738_p11 = scmp.eq.s32.totalorder %s1191_s22, 0 }
  0x3b   : > { %p130_p2 = scmp.eq.s32.totalorder %s1359_s27, 7  ;;  %s1778_s26 = smov (%p36_p6, %s1776_s26), 0 }
  0x3c   : > { %p1374_p13 = por %p1738_p11, %p48_p8  ;;  %1740 = sst [smem:[#allocation16_spill]] %s1778_s26 }
  0x3d   : > { %p1384_p1 = por %p55_p9, %p54_p12  ;;  %p1742_p4 = scmp.ne.s32.totalorder %s1155_s13, %s1151_s12 }
  0x3e   : > { %s38_s25 = ssub.s32 %s1187_s21, %s1778_s26  ;;  %p1397_p3 = por %p130_p2, %p48_p8 }
  0x3f   : > { %s1741_s24 = scalar_select %p1384_p1, 1, 0 }
  0x40   : > { %p1391_p0 = por %p1742_p4, %p55_p9  ;;  %p39_p11 = scmp.eq.s32.totalorder %s38_s25, 0 }
  0x41   : > { %s1744_s4 = scalar_select %p1397_p3, 1, 0 }
  0x42   : > { %s1743_s9 = scalar_select %p1391_p0, 1, 0 }
  0x43   : > { %p136_p6 = scmp.eq.s32.totalorder %s717_s8, 7  ;;  %s156_s5 = sand.u32 1, %s1171_s17  }
  0x44   : > { %s746_s29 = sshll.u32 %s1187_s21, 9  ;;  %s720_s12 = sshll.u32 %s156_s5, 5 }
  0x45   : > { %s1404_s1 = scalar_select %p39_p11, %s1171_s17, %s41_s30  }
  0x46   : > { %p1409_p10 = por %p136_p6, %p54_p12  ;;  %s1416_s26 = scalar_lea.hbm %s1707_s0, %s746_s29 }
  0x47   : > { %1745 = sst [smem:[#allocation17_spill]] %s1404_s1  ;;  %p1747_p8 = scmp.lt.s32.totalorder %s1191_s22, 8 }
  0x48   : > { %s1746_s23 = scalar_select %p1409_p10, 1, 0 }
  0x49   : > { %p1422_p9 = pnand %p1747_p8, %p1374_p13  ;;  %s160_s30 = scalar_lea.vmem [#allocation2], %s720_s12 }
  0x4a   : > { %s168_s25 = sshll.u32 %s160_s30, 4  ;;  %s1749_s21 = sand.u32 1, %s1159_s14   ;;  %s1430_s25 = int_to_ptr.vmem [resolvable:$true] %s168_s25 }
  0x4b   : > { %s1428_s1 = sshll.u32 %s1749_s21, 8  ;;  %s1432_s3 = scalar_lea.sflag [#allocation3], %s156_s5 }
  0x4c   : > { %s1005_s28 = scalar_lea.hbm %s1416_s26, 512  ;;  %p1007_p2 = pneg %p1422_p9 }
  0x4d   : > { %p1006_p12 = scmp.ne.s32.totalorder %s1416_s26, %s1005_s28  ;;  %s1010_s12 = scalar_lea.hbm %s1707_s0, 1024 }
  0x4e   : > { %p1011_p11 = scmp.lt.u32.totalorder %s1416_s26, %s1707_s0  ;;  %p1012_p6 = scmp.lt.u32.totalorder %s1010_s12, %s1005_s28 }
  0x4f   : > { %p1008_p13 = pnand %p1007_p2, %p1006_p12  ;;  %p1014_p10 = scmp.lt.u32.totalorder %s1005_s28, %s1416_s26 }
  0x50   : > { %p1013_p8 = por %p1012_p6, %p1011_p11 }
  0x51   : > { %p1009_p4 = pneg %p1008_p13 }
  0x52   : > { %p1015_p3 = por %p1014_p10, %p1013_p8 }
  0x54   : > { %p1016_p0 = pnand %p1015_p3, %p1009_p4 }
  0x56   : > { %1019 = shalt.err (!%p1016_p0)
}
  0x57   : > { %s1020_s21 = scalar_lea.vmem %s1430_s25, 512  ;;  %s1197_s5 = smov [#allocation2]  }
  0x58   : > { %p1021_p12 = scmp.ne.s32.totalorder %s1430_s25, %s1020_s21  ;;  %s1025_s29 = sshll.u32 %s1197_s5, 4  ;;  %s1026_s29 = int_to_ptr.vmem [resolvable:$false] %s1025_s29 }
  0x59   : > { %s1027_s17 = scalar_lea.vmem %s1026_s29, 1024  ;;  %p1028_p5 = scmp.lt.s32.totalorder %s1430_s25, %s1026_s29 }
  0x5a   : > { %p1023_p13 = pnand %p1021_p12, %p1007_p2  ;;  %p1029_p11 = scmp.lt.s32.totalorder %s1027_s17, %s1020_s21 }
  0x5c   : > { %p1024_p1 = pneg %p1023_p13  ;;  %p1030_p6 = por %p1029_p11, %p1028_p5 }
  0x5e   : > { %p1031_p10 = pnand %p1030_p6, %p1024_p1 }
  0x60   : > { %1034 = shalt.err (!%p1031_p10)
}
  0x61   : > { %s1750_s28 = smov 16   ;;  %s1751_s7 = smov 256  }
  0x62   : > { %859 = dma.hbm_to_vmem [thread:$0]  (!%p1422_p9), %s1416_s26, 512, %s1430_s25, %s1432_s3, %s1751_s7, %s1751_s7, %s1750_s28  }
  0x63   : > { %s749_s12 = sshll.u32 %s1183_s20, 12  ;;  %s203_s8 = scalar_lea.vmem [#allocation7], %s1428_s1 }
  0x64   : > { %s1467_s21 = scalar_lea.hbm %s1709_s2, %s749_s12  ;;  %s211_s29 = sshll.u32 %s203_s8, 4  ;;  %s1470_s29 = int_to_ptr.vmem [resolvable:$true] %s211_s29 }
  0x65   : > { %s1035_s17 = scalar_lea.hbm %s1467_s21, 4096  ;;  %p1752_p1 = pneg %p1314_p7 }
  0x66   : > { %p1036_p5 = scmp.ne.s32.totalorder %s1467_s21, %s1035_s17  ;;  %s1040_s3 = scalar_lea.hbm %s1709_s2, 16384 }
  0x67   : > { %p1041_p9 = scmp.lt.u32.totalorder %s1467_s21, %s1709_s2  ;;  %p1042_p2 = scmp.lt.u32.totalorder %s1040_s3, %s1035_s17 }
  0x68   : > { %p1038_p0 = pnand %p1036_p5, %p1752_p1  ;;  %p1044_p8 = scmp.lt.u32.totalorder %s1035_s17, %s1467_s21 }
  0x69   : > { %p1043_p4 = por %p1042_p2, %p1041_p9 }
  0x6a   : > { %p1039_p3 = pneg %p1038_p0 }
  0x6b   : > { %p1045_p12 = por %p1044_p8, %p1043_p4 }
  0x6d   : > { %p1046_p13 = pnand %p1045_p12, %p1039_p3 }
  0x6f   : > { %1049 = shalt.err (!%p1046_p13)
}
  0x70   : > { %s1050_s1 = scalar_lea.vmem %s1470_s29, 4096  ;;  %p1753_p6 = pmov %p1752_p1 }
  0x71   : > { %p1051_p11 = scmp.ne.s32.totalorder %s1470_s29, %s1050_s1  ;;  %s1198_s5 = smov [#allocation7]  }
  0x72   : > { %s1055_s8 = sshll.u32 %s1198_s5, 4  ;;  %s1056_s8 = int_to_ptr.vmem [resolvable:$false] %s1055_s8 }
  0x73   : > { %p1053_p10 = pnand %p1051_p11, %p1753_p6  ;;  %s1057_s26 = scalar_lea.vmem %s1056_s8, 8192 }
  0x74   : > { %p1058_p1 = scmp.lt.s32.totalorder %s1470_s29, %s1056_s8  ;;  %p1059_p0 = scmp.lt.s32.totalorder %s1057_s26, %s1050_s1 }
  0x75   : > { %p1054_p5 = pneg %p1053_p10 }
  0x76   : > { %p1060_p9 = por %p1059_p0, %p1058_p1 }
  0x78   : > { %p1061_p2 = pnand %p1060_p9, %p1054_p5 }
  0x7a   : > { %1064 = shalt.err (!%p1061_p2)
}
  0x7b   : > { %865 = dma.hbm_to_vmem [thread:$0]  (!%p1314_p7), %s1467_s21, 4096, %s1470_s29, %s1321_s11, %s1751_s7, %s1751_s7, %s1750_s28  }
  0x7c   : > { %p1754_p3 = scmp.ne.s32.totalorder %s1737_s6, 0 }
  0x7d   : > { %s1502_s17 = sand.u32 (!%p1754_p3), 1, %s1167_s16   ;;  %p1755_p4 = scmp.ne.s32.totalorder (!%p1754_p3), %s1741_s24, 0 }
  0x7e   : > { %223 = sbr.rel (%p1754_p3) target bundleno = 692 (0x2b4), region = 32  ;;  %s732_s25 = sshll.u32 (!%p1754_p3), %s1502_s17, 5 }
  0x7f   : > { %s226_s3 = scalar_lea.sflag (!%p1754_p3), [#allocation3], %s1502_s17  ;;  %s1506_s12 = scalar_lea.vmem (!%p1754_p3), [#allocation2], %s732_s25 }
  0x85   : > { %1138 = dma.done.wait (%p1755_p4), %s226_s3, 512  }
  0x86   : > { %1140 = vsyncadd (%p1755_p4), %s226_s3, 4294966784  ;;  %s234_s10 = sand.u32 1, %s1359_s27   ;;  %s236_s11 = sand.u32 1, %s1155_s13  }
  0x87   : > { %s733_s6 = sshll.u32 %s236_s11, 9  ;;  %s235_s28 = scalar_lea.sflag [#allocation6], %s234_s10 }
  0x88   : > { %s1514_s7 = scalar_lea.vmem [#allocation5], %s733_s6  ;;  %p1756_p7 = scmp.ne.s32.totalorder %s1743_s9, 0 }
  0x8a   : > { %1142 = dma.done.wait (%p1756_p7), %s235_s28, 12288  }
  0x8b   : > { %1144 = vsyncadd (%p1756_p7), %s235_s28, 4294955008  ;;  %s734_s21 = sshll.u32 %s236_s11, 8  ;;  %s1522_s30 = scalar_lea.vmem [#allocation8], %s732_s25 }
  0x8c   : > { %s1520_s29 = scalar_lea.vmem [#allocation7], %s734_s21  ;;  %p736_p8 = scmp.ne.s32.totalorder %s1175_s18, 0 }
  0x8d   : > { %v1199_v0 = vmov (!%p736_p8), 0.0  }
  0x8e   : > { %287 = sbr.rel (%p736_p8) target bundleno = 149 (0x95), region = 48  ;;  %288 = vst [vmem:[%s1522_s30] sm:$0xff] (!%p736_p8), %v1199_v0  ;;  %289 = vst [vmem:[%s1522_s30 + $0x8] sm:$0xff] (!%p736_p8), %v1199_v0 }
  0x8f   : > { %290 = vst [vmem:[%s1522_s30 + $0x10] sm:$0xff] (!%p736_p8), %v1199_v0  ;;  %291 = vst [vmem:[%s1522_s30 + $0x18] sm:$0xff] (!%p736_p8), %v1199_v0 }
  0x95 PF: > { %v297_v1 = vld [vmem:[%s1514_s7 + $0x8] sm:$0xff]  ;;  %v299_v2 = vld [vmem:[%s1514_s7 + $0x18] sm:$0xff]  ;;  %v296_v3 = vld [vmem:[%s1514_s7] sm:$0xff]  ;;  %s751_s18 = sshll.u32 %s1179_s19, 9  ;;  %s589_s27 = sshll.u32 %s1522_s30, 4  ;;  %s1642_s27 = int_to_ptr.vmem [resolvable:$true] %s589_s27 }
  0x96   : > { %v752_v4 = vpack.c.bf16 %v299_v2, %v297_v1  ;;  %v298_v5 = vld [vmem:[%s1514_s7 + $0x10] sm:$0xff]  ;;  %v301_v6 = vld [vmem:[%s1514_s7 + $0x28] sm:$0xff]  ;;  %v303_v7 = vld [vmem:[%s1514_s7 + $0x38] sm:$0xff]  ;;  %s1757_s1 = sld [smem:[#allocation19_spill]]  ;;  %s575_s19 = scalar_lea.sflag [#allocation4], %s1502_s17 }
  0x97   : > { %v754_v8 = vpack.c.bf16 %v298_v5, %v296_v3  ;;  %v756_v9 = vpack.c.bf16 %v303_v7, %v301_v6  ;;  %v300_v10 = vld [vmem:[%s1514_s7 + $0x20] sm:$0xff]  ;;  %v302_v11 = vld [vmem:[%s1514_s7 + $0x30] sm:$0xff]  ;;  %v305_v12 = vld [vmem:[%s1514_s7 + $0x48] sm:$0xff]  ;;  %s1065_s8 = scalar_lea.vmem %s1642_s27, 512  ;;  %p1758_p13 = scmp.ne.s32.totalorder %s1744_s4, 0 }
  0x98   : > { %753 = vmatprep.subr.bf16.mxu0 %v752_v4  ;;  %v307_v13 = vld [vmem:[%s1514_s7 + $0x58] sm:$0xff]  ;;  %v758_v14 = vpack.c.bf16 %v302_v11, %v300_v10  ;;  %v304_v16 = vld [vmem:[%s1514_s7 + $0x40] sm:$0xff]  ;;  %v306_v17 = vld [vmem:[%s1514_s7 + $0x50] sm:$0xff]  ;;  %p1066_p12 = scmp.ne.s32.totalorder %s1642_s27, %s1065_s8  ;;  %s1201_s26 = smov [#allocation8]  }
  0x99   : > { %755 = vmatpush1.bf16.msra.mxu0 %v754_v8  ;;  %v760_v15 = vpack.c.bf16 %v307_v13, %v305_v12  ;;  %v309_v18 = vld [vmem:[%s1514_s7 + $0x68] sm:$0xff]  ;;  %v311_v19 = vld [vmem:[%s1514_s7 + $0x78] sm:$0xff]  ;;  %v762_v20 = vpack.c.bf16 %v306_v17, %v304_v16  ;;  %v308_v22 = vld [vmem:[%s1514_s7 + $0x60] sm:$0xff]  ;;  %s1069_s25 = sshll.u32 %s1201_s26, 4  ;;  %s1070_s25 = int_to_ptr.vmem [resolvable:$false] %s1069_s25 }
  0x9a   : > { %757 = vmatprep.subr.bf16.mxu0 %v756_v9  ;;  %v764_v21 = vpack.c.bf16 %v311_v19, %v309_v18  ;;  %v310_v23 = vld [vmem:[%s1514_s7 + $0x70] sm:$0xff]  ;;  %v313_v24 = vld [vmem:[%s1514_s7 + $0x88] sm:$0xff]  ;;  %v315_v25 = vld [vmem:[%s1514_s7 + $0x98] sm:$0xff]  ;;  %p1067_p11 = pnand %p1066_p12, %p1758_p13  ;;  %s1071_s3 = scalar_lea.vmem %s1070_s25, 1024 }
  0x9b   : > { %v766_v26 = vpack.c.bf16 %v310_v23, %v308_v22  ;;  %v768_v27 = vpack.c.bf16 %v315_v25, %v313_v24  ;;  %v312_v28 = vld [vmem:[%s1514_s7 + $0x80] sm:$0xff]  ;;  %v314_v29 = vld [vmem:[%s1514_s7 + $0x90] sm:$0xff]  ;;  %v317_v30 = vld [vmem:[%s1514_s7 + $0xa8] sm:$0xff]  ;;  %p1072_p10 = scmp.lt.s32.totalorder %s1642_s27, %s1070_s25  ;;  %p1073_p5 = scmp.lt.s32.totalorder %s1071_s3, %s1065_s8 }
  0x9c   : > { %v319_v31 = vld [vmem:[%s1514_s7 + $0xb8] sm:$0xff]  ;;  %v770_v32 = vpack.c.bf16 %v314_v29, %v312_v28  ;;  %v316_v34 = vld [vmem:[%s1514_s7 + $0xa0] sm:$0xff]  ;;  %v318_v35 = vld [vmem:[%s1514_s7 + $0xb0] sm:$0xff]  ;;  %s1640_s5 = scalar_lea.hbm %s1757_s1, %s751_s18  ;;  %p1068_p6 = pneg %p1067_p11 }
  0x9d   : > { %759 = vmatpush1.bf16.msra.mxu0 %v758_v14  ;;  %v772_v33 = vpack.c.bf16 %v319_v31, %v317_v30  ;;  %v321_v36 = vld [vmem:[%s1514_s7 + $0xc8] sm:$0xff]  ;;  %v323_v37 = vld [vmem:[%s1514_s7 + $0xd8] sm:$0xff]  ;;  %v774_v38 = vpack.c.bf16 %v318_v35, %v316_v34  ;;  %v320_v40 = vld [vmem:[%s1514_s7 + $0xc0] sm:$0xff]  ;;  %p1074_p1 = por %p1073_p5, %p1072_p10 }
  0x9e   : > { %761 = vmatprep.subr.bf16.mxu0 %v760_v15  ;;  %v776_v39 = vpack.c.bf16 %v323_v37, %v321_v36  ;;  %v322_v41 = vld [vmem:[%s1514_s7 + $0xd0] sm:$0xff]  ;;  %v293_v42 = vld [vmem:[%s1506_s12 + $0x8] sm:$0xff]  ;;  %v327_v44 = vld [vmem:[%s1514_s7 + $0xf8] sm:$0xff] }
  0x9f   : > { %v325_v43 = vld [vmem:[%s1514_s7 + $0xe8] sm:$0xff]  ;;  %424 = vmatprep.mubr.f32.mxu0 %v293_v42  ;;  %v460_v46 = vld [vmem:[%s1520_s29 + $0x18] sm:$0xff]  ;;  %v778_v47 = vpack.c.bf16 %v322_v41, %v320_v40  ;;  %v324_v50 = vld [vmem:[%s1514_s7 + $0xe0] sm:$0xff]  ;;  %p1075_p0 = pnand %p1074_p1, %p1068_p6 }
  0xa0   : > { %v458_v45 = vld [vmem:[%s1520_s29 + $0x8] sm:$0xff]  ;;  %v780_v49 = vpack.c.bf16 %v327_v44, %v325_v43  ;;  %v326_v51 = vld [vmem:[%s1514_s7 + $0xf0] sm:$0xff]  ;;  %v331_v53 = vld [vmem:[%s1514_s7 + $0x118] sm:$0xff] }
  0xa1   : > { %763 = vmatpush1.bf16.msra.mxu0 %v762_v20  ;;  %v816_v48 = vpack.c.bf16 %v460_v46, %v458_v45  ;;  %v329_v52 = vld [vmem:[%s1514_s7 + $0x108] sm:$0xff]  ;;  %v782_v54 = vpack.c.bf16 %v326_v51, %v324_v50  ;;  %v328_v56 = vld [vmem:[%s1514_s7 + $0x100] sm:$0xff]  ;;  %v330_v57 = vld [vmem:[%s1514_s7 + $0x110] sm:$0xff] }
  0xa2   : > { %765 = vmatprep.subr.bf16.mxu0 %v764_v21  ;;  %v784_v55 = vpack.c.bf16 %v331_v53, %v329_v52  ;;  %v333_v58 = vld [vmem:[%s1514_s7 + $0x128] sm:$0xff]  ;;  %v335_v59 = vld [vmem:[%s1514_s7 + $0x138] sm:$0xff]  ;;  %v786_v60 = vpack.c.bf16 %v330_v57, %v328_v56  ;;  %v332_v62 = vld [vmem:[%s1514_s7 + $0x120] sm:$0xff] }
  0xa3   : > { %817 = vmatprep.subr.bf16.mxu1 %v816_v48  ;;  %v788_v61 = vpack.c.bf16 %v335_v59, %v333_v58  ;;  %v334_v63 = vld [vmem:[%s1514_s7 + $0x130] sm:$0xff]  ;;  %v337_v0 = vld [vmem:[%s1514_s7 + $0x148] sm:$0xff]  ;;  %v339_v1 = vld [vmem:[%s1514_s7 + $0x158] sm:$0xff] }
  0xa4   : > { %v790_v2 = vpack.c.bf16 %v334_v63, %v332_v62  ;;  %v792_v3 = vpack.c.bf16 %v339_v1, %v337_v0  ;;  %v336_v4 = vld [vmem:[%s1514_s7 + $0x140] sm:$0xff]  ;;  %v338_v5 = vld [vmem:[%s1514_s7 + $0x150] sm:$0xff]  ;;  %v341_v6 = vld [vmem:[%s1514_s7 + $0x168] sm:$0xff] }
  0xa5   : > { %767 = vmatpush1.bf16.msra.mxu0 %v766_v26  ;;  %v343_v7 = vld [vmem:[%s1514_s7 + $0x178] sm:$0xff]  ;;  %v794_v8 = vpack.c.bf16 %v338_v5, %v336_v4  ;;  %v340_v10 = vld [vmem:[%s1514_s7 + $0x160] sm:$0xff]  ;;  %v342_v11 = vld [vmem:[%s1514_s7 + $0x170] sm:$0xff] }
  0xa6   : > { %769 = vmatprep.subr.bf16.mxu0 %v768_v27  ;;  %v796_v9 = vpack.c.bf16 %v343_v7, %v341_v6  ;;  %v345_v12 = vld [vmem:[%s1514_s7 + $0x188] sm:$0xff]  ;;  %v347_v13 = vld [vmem:[%s1514_s7 + $0x198] sm:$0xff]  ;;  %v798_v14 = vpack.c.bf16 %v342_v11, %v340_v10  ;;  %v344_v16 = vld [vmem:[%s1514_s7 + $0x180] sm:$0xff] }
  0xa7   : > { %v800_v15 = vpack.c.bf16 %v347_v13, %v345_v12  ;;  %v346_v17 = vld [vmem:[%s1514_s7 + $0x190] sm:$0xff]  ;;  %v349_v18 = vld [vmem:[%s1514_s7 + $0x1a8] sm:$0xff]  ;;  %v351_v19 = vld [vmem:[%s1514_s7 + $0x1b8] sm:$0xff] }
  0xa8   : > { %v802_v20 = vpack.c.bf16 %v346_v17, %v344_v16  ;;  %v804_v21 = vpack.c.bf16 %v351_v19, %v349_v18  ;;  %v348_v22 = vld [vmem:[%s1514_s7 + $0x1a0] sm:$0xff]  ;;  %v350_v23 = vld [vmem:[%s1514_s7 + $0x1b0] sm:$0xff]  ;;  %v353_v24 = vld [vmem:[%s1514_s7 + $0x1c8] sm:$0xff] }
  0xa9   : > { %771 = vmatpush1.bf16.msra.mxu0 %v770_v32  ;;  %v355_v25 = vld [vmem:[%s1514_s7 + $0x1d8] sm:$0xff]  ;;  %v806_v26 = vpack.c.bf16 %v350_v23, %v348_v22  ;;  %v352_v28 = vld [vmem:[%s1514_s7 + $0x1c0] sm:$0xff]  ;;  %v354_v29 = vld [vmem:[%s1514_s7 + $0x1d0] sm:$0xff] }
  0xaa   : > { %773 = vmatprep.subr.bf16.mxu0 %v772_v33  ;;  %v808_v27 = vpack.c.bf16 %v355_v25, %v353_v24  ;;  %v357_v30 = vld [vmem:[%s1514_s7 + $0x1e8] sm:$0xff]  ;;  %v359_v31 = vld [vmem:[%s1514_s7 + $0x1f8] sm:$0xff]  ;;  %v810_v32 = vpack.c.bf16 %v354_v29, %v352_v28  ;;  %v356_v34 = vld [vmem:[%s1514_s7 + $0x1e0] sm:$0xff] }
  0xab   : > { %v812_v33 = vpack.c.bf16 %v359_v31, %v357_v30  ;;  %v358_v35 = vld [vmem:[%s1514_s7 + $0x1f0] sm:$0xff]  ;;  %v292_v37 = vld [vmem:[%s1506_s12] sm:$0xff]  ;;  %v462_v43 = vld [vmem:[%s1520_s29 + $0x28] sm:$0xff] }
  0xac   : > { %v814_v36 = vpack.c.bf16 %v358_v35, %v356_v34  ;;  %v457_v40 = vld [vmem:[%s1520_s29] sm:$0xff]  ;;  %v459_v41 = vld [vmem:[%s1520_s29 + $0x10] sm:$0xff]  ;;  %v464_v44 = vld [vmem:[%s1520_s29 + $0x38] sm:$0xff] }
  0xad   : > { %775 = vmatpush1.bf16.msra.mxu0 %v774_v38  ;;  %v295_v38 = vld [vmem:[%s1506_s12 + $0x18] sm:$0xff]  ;;  %v818_v42 = vpack.c.bf16 %v459_v41, %v457_v40  ;;  %v820_v45 = vpack.c.bf16 %v464_v44, %v462_v43  ;;  %v461_v46 = vld [vmem:[%s1520_s29 + $0x20] sm:$0xff]  ;;  %v467_v53 = vld [vmem:[%s1520_s29 + $0x50] sm:$0xff] }
  0xae   : > { %777 = vmatprep.subr.bf16.mxu0 %v776_v39  ;;  %v294_v39 = vld [vmem:[%s1506_s12 + $0x10] sm:$0xff]  ;;  %v468_v50 = vld [vmem:[%s1520_s29 + $0x58] sm:$0xff]  ;;  %v465_v52 = vld [vmem:[%s1520_s29 + $0x40] sm:$0xff] }
  0xaf   : > { %819 = vmatpush1.bf16.msra.mxu1 %v818_v42  ;;  %v472_v56 = vld [vmem:[%s1520_s29 + $0x78] sm:$0xff]  ;;  %v469_v58 = vld [vmem:[%s1520_s29 + $0x60] sm:$0xff]  ;;  %v471_v59 = vld [vmem:[%s1520_s29 + $0x70] sm:$0xff] }
  0xb0   : > { %821 = vmatprep.subr.bf16.mxu1 %v820_v45  ;;  %v476_v62 = vld [vmem:[%s1520_s29 + $0x98] sm:$0xff]  ;;  %v473_v0 = vld [vmem:[%s1520_s29 + $0x80] sm:$0xff]  ;;  %v475_v1 = vld [vmem:[%s1520_s29 + $0x90] sm:$0xff] }
  0xb1   : > { %779 = vmatpush1.bf16.msra.mxu0 %v778_v47  ;;  %v463_v47 = vld [vmem:[%s1520_s29 + $0x30] sm:$0xff]  ;;  %v480_v4 = vld [vmem:[%s1520_s29 + $0xb8] sm:$0xff]  ;;  %v477_v6 = vld [vmem:[%s1520_s29 + $0xa0] sm:$0xff] }
  0xb2   : > { %781 = vmatprep.subr.bf16.mxu0 %v780_v49  ;;  %v822_v48 = vpack.c.bf16 %v463_v47, %v461_v46  ;;  %v466_v49 = vld [vmem:[%s1520_s29 + $0x48] sm:$0xff]  ;;  %v479_v7 = vld [vmem:[%s1520_s29 + $0xb0] sm:$0xff]  ;;  %v484_v10 = vld [vmem:[%s1520_s29 + $0xd8] sm:$0xff] }
  0xb3   : > { %v824_v51 = vpack.c.bf16 %v468_v50, %v466_v49  ;;  %v481_v12 = vld [vmem:[%s1520_s29 + $0xc0] sm:$0xff]  ;;  %v483_v13 = vld [vmem:[%s1520_s29 + $0xd0] sm:$0xff]  ;;  %v488_v16 = vld [vmem:[%s1520_s29 + $0xf8] sm:$0xff] }
  0xb4   : > { %823 = vmatpush1.bf16.msra.mxu1 %v822_v48  ;;  %v485_v18 = vld [vmem:[%s1520_s29 + $0xe0] sm:$0xff]  ;;  %v487_v19 = vld [vmem:[%s1520_s29 + $0xf0] sm:$0xff]  ;;  %v456_v45 = vld [vmem:[%s1522_s30 + $0x18] sm:$0xff] }
  0xb5   : > { %783 = vmatpush1.bf16.msra.mxu0 %v782_v54  ;;  %v826_v54 = vpack.c.bf16 %v467_v53, %v465_v52  ;;  %825 = vmatprep.subr.bf16.mxu1 %v824_v51  ;;  %v455_v44 = vld [vmem:[%s1522_s30 + $0x10] sm:$0xff] }
  0xb6   : > { %785 = vmatprep.subr.bf16.mxu0 %v784_v55  ;;  %v470_v55 = vld [vmem:[%s1520_s29 + $0x68] sm:$0xff] }
  0xb7   : > { %v828_v57 = vpack.c.bf16 %v472_v56, %v470_v55 }
  0xb8   : > { %827 = vmatpush1.bf16.msra.mxu1 %v826_v54 }
  0xb9   : > { %787 = vmatpush1.bf16.msra.mxu0 %v786_v60  ;;  %v830_v60 = vpack.c.bf16 %v471_v59, %v469_v58  ;;  %829 = vmatprep.subr.bf16.mxu1 %v828_v57 }
  0xba   : > { %789 = vmatprep.subr.bf16.mxu0 %v788_v61  ;;  %v474_v61 = vld [vmem:[%s1520_s29 + $0x88] sm:$0xff] }
  0xbb   : > { %v832_v63 = vpack.c.bf16 %v476_v62, %v474_v61 }
  0xbc   : > { %831 = vmatpush1.bf16.msra.mxu1 %v830_v60 }
  0xbd   : > { %791 = vmatpush1.bf16.msra.mxu0 %v790_v2  ;;  %v834_v2 = vpack.c.bf16 %v475_v1, %v473_v0  ;;  %833 = vmatprep.subr.bf16.mxu1 %v832_v63 }
  0xbe   : > { %793 = vmatprep.subr.bf16.mxu0 %v792_v3  ;;  %v478_v3 = vld [vmem:[%s1520_s29 + $0xa8] sm:$0xff] }
  0xbf   : > { %v836_v5 = vpack.c.bf16 %v480_v4, %v478_v3 }
  0xc0   : > { %835 = vmatpush1.bf16.msra.mxu1 %v834_v2 }
  0xc1   : > { %795 = vmatpush1.bf16.msra.mxu0 %v794_v8  ;;  %v838_v8 = vpack.c.bf16 %v479_v7, %v477_v6  ;;  %837 = vmatprep.subr.bf16.mxu1 %v836_v5 }
  0xc2   : > { %797 = vmatprep.subr.bf16.mxu0 %v796_v9  ;;  %v482_v9 = vld [vmem:[%s1520_s29 + $0xc8] sm:$0xff] }
  0xc3   : > { %v840_v11 = vpack.c.bf16 %v484_v10, %v482_v9 }
  0xc4   : > { %839 = vmatpush1.bf16.msra.mxu1 %v838_v8 }
  0xc5   : > { %799 = vmatpush1.bf16.msra.mxu0 %v798_v14  ;;  %v842_v14 = vpack.c.bf16 %v483_v13, %v481_v12  ;;  %841 = vmatprep.subr.bf16.mxu1 %v840_v11 }
  0xc6   : > { %801 = vmatprep.subr.bf16.mxu0 %v800_v15  ;;  %v486_v15 = vld [vmem:[%s1520_s29 + $0xe8] sm:$0xff] }
  0xc7   : > { %v844_v17 = vpack.c.bf16 %v488_v16, %v486_v15 }
  0xc8   : > { %843 = vmatpush1.bf16.msra.mxu1 %v842_v14 }
  0xc9   : > { %803 = vmatpush1.bf16.msra.mxu0 %v802_v20  ;;  %v846_v20 = vpack.c.bf16 %v487_v19, %v485_v18  ;;  %845 = vmatprep.subr.bf16.mxu1 %v844_v17 }
  0xca   : > { %805 = vmatprep.subr.bf16.mxu0 %v804_v21  ;;  %v1200_v21 = vmov 0.0  }
  0xcb   : > { %553 = vmatprep.mubr.f32.mxu1 %v1200_v21 }
  0xcc   : > { %847 = vmatpush1.bf16.msra.mxu1 %v846_v20 }
  0xcd   : > { %807 = vmatpush1.bf16.msra.mxu0 %v806_v26 }
  0xce   : > { %809 = vmatprep.subr.bf16.mxu0 %v808_v27 }
  0xd1   : > { %811 = vmatpush1.bf16.msra.mxu0 %v810_v32 }
  0xd2   : > { %813 = vmatprep.subr.bf16.mxu0 %v812_v33 }
  0xd5   : > { %815 = vmatpush1.bf16.msra.mxu0 %v814_v36 }
  0xd8   : > { %425 = vmatmul.mubr.f32.vlgmr.msra.gmra.mrb[0].mxu0 %v292_v37 }
  0xd9   : > { %430 = vmatprep.mubr.f32.mxu0 %v295_v38  ;;  %v453_v38 = vld [vmem:[%s1522_s30] sm:$0xff] }
  0xdc   : > { %431 = vmatmul.mubr.f32.gmra.mrb[2].mxu0 %v294_v39  ;;  %v454_v39 = vld [vmem:[%s1522_s30 + $0x8] sm:$0xff] }
 0x1ab   : > { %v426_v22 = vpop.f32.mrb[0].mxu0 }
 0x1ac   : > { %v737_v23 = vmul.f32 -1.442695, %v426_v22  ;;  %v428_v24 = vpop.f32.mrb[1].mxu0 }
 0x1ae   : > { %967 = vpow2.f32 %v737_v23 }
 0x1af   : > { %v432_v25 = vpop.f32.mrb[2].mxu0 }
 0x1b0   : > { %v738_v26 = vmul.f32 -1.442695, %v432_v25  ;;  %v434_v27 = vpop.f32.mrb[3].mxu0 }
 0x1b2   : > { %969 = vpow2.f32 %v738_v26 }
 0x1b8   : > { %v968_v28 = vpop.eup %967 }
 0x1b9   : > { %v443_v29 = vadd.f32 1.0, %v968_v28 }
 0x1bb   : > { %971 = vrcp.f32 %v443_v29 }
 0x1bc   : > { %v970_v30 = vpop.eup %969 }
 0x1bd   : > { %v444_v31 = vadd.f32 1.0, %v970_v30 }
 0x1bf   : > { %973 = vrcp.f32 %v444_v31 }
 0x1c5   : > { %v972_v32 = vpop.eup %971 }
 0x1c6   : > { %v449_v33 = vmul.f32 %v972_v32, %v426_v22 }
 0x1c8   : > { %v451_v34 = vmul.f32 %v449_v33, %v428_v24 }
 0x1c9   : > { %v974_v35 = vpop.eup %973 }
 0x1ca   : > { %v450_v36 = vmul.f32 %v974_v35, %v432_v25  ;;  %554 = vmatmul.mubr.f32.vlgmr.msra.gmra.mrb[0].mxu1 %v451_v34 }
 0x1cb   : > { %559 = vmatprep.mubr.f32.mxu1 %v1200_v21 }
 0x1cc   : > { %v452_v37 = vmul.f32 %v450_v36, %v434_v27 }
 0x1ce   : > { %560 = vmatmul.mubr.f32.gmra.mrb[2].mxu1 %v452_v37 }
 0x29d   : > { %v555_v40 = vpop.f32.mrb[0].mxu1 }
 0x29e   : > { %v566_v41 = vadd.f32 %v555_v40, %v453_v38  ;;  %v557_v42 = vpop.f32.mrb[1].mxu1 }
 0x29f   : > { %v567_v43 = vadd.f32 %v557_v42, %v454_v39 }
 0x2a0   : > { %570 = vst [vmem:[%s1522_s30] sm:$0xff] %v566_v41 }
 0x2a1   : > { %571 = vst [vmem:[%s1522_s30 + $0x8] sm:$0xff] %v567_v43  ;;  %v561_v46 = vpop.f32.mrb[2].mxu1 }
 0x2a2   : > { %v568_v47 = vadd.f32 %v561_v46, %v455_v44  ;;  %v563_v48 = vpop.f32.mrb[3].mxu1 }
 0x2a3   : > { %v569_v49 = vadd.f32 %v563_v48, %v456_v45 }
 0x2a4   : > { %572 = vst [vmem:[%s1522_s30 + $0x10] sm:$0xff] %v568_v47 }
 0x2a5   : > { %573 = vst [vmem:[%s1522_s30 + $0x18] sm:$0xff] %v569_v49 }
 0x2a6   : > { %1078 = shalt.err (!%p1075_p0)
}
 0x2a7   : > { %s1079_s12 = scalar_lea.hbm %s1640_s5, 512  ;;  %s1083_s6 = scalar_lea.hbm %s1757_s1, 1024 }
 0x2a8   : > { %p1080_p9 = scmp.ne.s32.totalorder %s1640_s5, %s1079_s12  ;;  %p1084_p4 = scmp.lt.u32.totalorder %s1640_s5, %s1757_s1 }
 0x2a9   : > { %p1085_p7 = scmp.lt.u32.totalorder %s1083_s6, %s1079_s12  ;;  %p1087_p12 = scmp.lt.u32.totalorder %s1079_s12, %s1640_s5 }
 0x2aa   : > { %p1081_p2 = pnand %p1080_p9, %p1758_p13 }
 0x2ab   : > { %p1086_p8 = por %p1085_p7, %p1084_p4 }
 0x2ac   : > { %p1082_p3 = pneg %p1081_p2 }
 0x2ad   : > { %p1088_p11 = por %p1087_p12, %p1086_p8 }
 0x2af   : > { %p1089_p6 = pnand %p1088_p11, %p1082_p3 }
 0x2b1   : > { %1092 = shalt.err (!%p1089_p6)
}
 0x2b2   : > { %s1202_s21 = smov 256   ;;  %s1203_s29 = smov 16  }
 0x2b3   : > { %854 = dma.vmem_to_hbm [thread:$0]  (%p1758_p13), %s1642_s27, 512, %s1640_s5, %s575_s19, %s1202_s21, %s1202_s21, %s1203_s29  }
 0x2b4 PF: > { %p871_p10 = scmp.ge.s32.totalorder %s1191_s22, 2  ;;  %s604_s30 = sand.u32 1, %s1163_s15  }
 0x2b5   : > { %p1759_p5 = scmp.ne.s32.totalorder %s1746_s23, 0  ;;  %s605_s18 = scalar_lea.sflag [#allocation4], %s604_s30 }
 0x2b7   : > { %p867_p1 = pnand %p871_p10, %p1759_p5 }
 0x2b9   : > { %1146 = dma.done.wait (!%p867_p1), %s605_s18, 512  }
 0x2ba   : > { %1148 = vsyncadd (!%p867_p1), %s605_s18, 4294966784  ;;  %s22_s22 = sadd.s32 1, %s1191_s22   ;;  %s1760_s24 = sld [smem:[#allocation15_spill]] }
 0x2bb   : > { %p19_p0 = scmp.ge.s32.totalorder %s22_s22, 10   ;;  %s1761_s4 = sld [smem:[#allocation12_spill]] }
 0x2bc   : > { %s1762_s17 = sld [smem:[#allocation17_spill]]  ;;  %s1763_s19 = sld [smem:[#allocation13_spill]] }
 0x2bd   : > { %s1764_s27 = sld [smem:[#allocation14_spill]]  ;;  %s1765_s21 = sld [smem:[#allocation16_spill]] }
 0x2be   : > { %s1766_s12 = smov %s1155_s13  ;;  %s1767_s13 = smov %s1159_s14 }
 0x2bf   : > { %s1769_s15 = smov %s1167_s16  ;;  %s1771_s18 = smov %s1183_s20 }
 0x2c0   : > { %s1768_s14 = smov %s1760_s24  ;;  %21 = sbr.rel (!%p19_p0) target bundleno = 14 (0xe), region = 105 }
 0x2c1   : > { %s1770_s16 = smov %s1761_s4 }
 0x2c3   : > { %s1772_s20 = smov %s1764_s27 }
 0x2c7   :  { %610 = vsyncpa [#allocation3], 1 }
 0x2c8   :  { %612 = vsyncpa [#allocation3 + $0x1], 1 }
 0x2c9   :  { %613 = vsyncpa [#allocation6], 1 }
 0x2ca   :  { %615 = vsyncpa [#allocation6 + $0x1], 1 }
 0x2cb   :  { %616 = vsyncpa [#allocation4], 1 }
 0x2cc   :  { %618 = vsyncpa [#allocation4 + $0x1], 1 }

</bundles_post_ra>
